<compile_context>
chip_gen: v7x
topology: tpu7x:2x2x1
jax: 0.10.0
libtpu: 0.0.40
codegen_flags: <defaults>
</compile_context>

<pallas_src>
import jax
import jax.numpy as jnp
import numpy as np
from jax.experimental import pallas as pl
from jax.experimental.pallas import tpu as pltpu


def poly_kernel(t_ref, w_ref, o_ref):
    """Evaluate sum_k w[d,k] * t^(k+1) per channel with Horner on the VPU.

    t_ref : (1, TN)        VMEM  -- lane-major tile of flattened timesteps
    w_ref : (dim, degree)  SMEM  -- nn.Linear weight, read as scalars
    o_ref : (dim, TN)      VMEM  -- lane-dense output tile (transposed layout)
    """
    t = t_ref[...]                               # (1, TN)
    dim = o_ref.shape[0]
    degree = w_ref.shape[1]
    for d in range(dim):                         # static unroll (dim is small)
        # Horner: (((w[d,deg-1]*t + w[d,deg-2])*t + ...) + w[d,0]) * t
        acc = w_ref[d, degree - 1] * t           # SMEM scalar broadcast
        for k in range(degree - 2, -1, -1):
            acc = (acc + w_ref[d, k]) * t        # pure VPU FMAs
        o_ref[d:d + 1, :] = acc


def polynomial_forward(t, w, *, lane_tile=4096):
    """t: (B, L) timesteps, w: (dimension, degree) = nn.Linear.weight."""
    B, L = t.shape
    dim, degree = w.shape
    N = B * L

    # Lane tile must be a multiple of 128; clamp to the (128-padded) problem.
    lane_tile = ((lane_tile + 127) // 128) * 128
    n128 = ((N + 127) // 128) * 128
    tn = min(lane_tile, n128)
    n_pad = ((N + tn - 1) // tn) * tn

    t_flat = t.reshape(1, N).astype(jnp.float32)
    if n_pad != N:
        t_flat = jnp.pad(t_flat, ((0, 0), (0, n_pad - N)))
    w32 = w.astype(jnp.float32)

    cost = pl.CostEstimate(
        flops=2 * n_pad * degree * dim,
        transcendentals=0,
        bytes_accessed=4 * n_pad * (1 + dim),
    )

    out_t = pl.pallas_call(
        poly_kernel,
        out_shape=jax.ShapeDtypeStruct((dim, n_pad), jnp.float32),
        grid_spec=pltpu.PrefetchScalarGridSpec(
            num_scalar_prefetch=0,
            grid=(n_pad // tn,),
            in_specs=[
                pl.BlockSpec((1, tn), lambda i: (0, i)),
                pl.BlockSpec(memory_space=pltpu.MemorySpace.SMEM),
            ],
            out_specs=pl.BlockSpec((dim, tn), lambda i: (0, i)),
        ),
        compiler_params=pltpu.CompilerParams(
            dimension_semantics=("parallel",)),
        cost_estimate=cost,
    )(t_flat, w32)

    out = out_t[:, :N]                           # (dim, N), drop padding
    return jnp.transpose(out).reshape(B, L, dim)


def polynomial_reference(t, w):
    """Pure-JAX reference matching the PyTorch forward (in f32)."""
    degree = w.shape[1]
    t32 = t.astype(jnp.float32)
    feats = jnp.stack([t32 ** i for i in range(1, degree + 1)], axis=-1)
    return jnp.einsum("bld,od->blo", feats, w.astype(jnp.float32))


def _run_case(key, batch, seq, degree, dimension):
    k_w, k_t = jax.random.split(key)
    bound = 1.0 / np.sqrt(degree)
    w = jax.random.uniform(k_w, (dimension, degree), jnp.float32,
                           minval=-bound, maxval=bound)
    t = jax.random.uniform(k_t, (batch, seq), jnp.float32,
                           minval=0.0, maxval=1.0)
    out = jax.block_until_ready(polynomial_forward(t, w))
    ref = polynomial_reference(t, w)
    np.testing.assert_allclose(np.asarray(out), np.asarray(ref),
                               rtol=1e-5, atol=1e-5)
    assert out.shape == (batch, seq, dimension)


if __name__ == "__main__":
    key = jax.random.PRNGKey(0)
    k1, k2 = jax.random.split(key)

    # Small shape matching the module's typical use (B=2, L=8, deg=3, dim=4).
    _run_case(k1, batch=2, seq=8, degree=3, dimension=4)

    # Larger / non-aligned shape to exercise the multi-block + padded-tail path.
    _run_case(k2, batch=4, seq=2500, degree=5, dimension=6)

    print("KERNEL_OK")
</pallas_src>

<mosaic_0001>
module attributes {stable_mosaic.version = 11 : i64} {
  func.func @poly_kernel(%arg0: i32, %arg1: memref<1x128xf32, #tpu.memory_space<vmem>>, %arg2: memref<4x3xf32, #tpu.memory_space<smem>>, %arg3: memref<4x128xf32, #tpu.memory_space<vmem>>) attributes {dimension_semantics = [#tpu.dimension_semantics<parallel>], iteration_bounds = array<i64: 1>, scalar_prefetch = 0 : i64, scratch_operands = 0 : i64, tpu.core_type = #tpu.core_type<tc>, window_params = [{transform_indices = @transform_0, window_bounds = array<i64: 1, 128>}, {transform_indices = @transform_1, window_bounds = array<i64: 4, 3>}, {transform_indices = @transform_2, window_bounds = array<i64: 4, 128>}]} {
    %c0 = arith.constant 0 : index
    %c0_0 = arith.constant 0 : index
    %0 = vector.load %arg1[%c0, %c0_0] : memref<1x128xf32, #tpu.memory_space<vmem>>, vector<1x128xf32>
    %c0_1 = arith.constant 0 : index
    %c2 = arith.constant 2 : index
    %1 = memref.load %arg2[%c0_1, %c2] : memref<4x3xf32, #tpu.memory_space<smem>>
    %2 = vector.broadcast %1 : f32 to vector<1x128xf32>
    %3 = arith.mulf %2, %0 : vector<1x128xf32>
    %c0_2 = arith.constant 0 : index
    %c1 = arith.constant 1 : index
    %4 = memref.load %arg2[%c0_2, %c1] : memref<4x3xf32, #tpu.memory_space<smem>>
    %5 = vector.broadcast %4 : f32 to vector<1x128xf32>
    %6 = arith.addf %3, %5 : vector<1x128xf32>
    %7 = arith.mulf %6, %0 : vector<1x128xf32>
    %c0_3 = arith.constant 0 : index
    %c0_4 = arith.constant 0 : index
    %8 = memref.load %arg2[%c0_3, %c0_4] : memref<4x3xf32, #tpu.memory_space<smem>>
    %9 = vector.broadcast %8 : f32 to vector<1x128xf32>
    %10 = arith.addf %7, %9 : vector<1x128xf32>
    %11 = arith.mulf %10, %0 : vector<1x128xf32>
    %c0_5 = arith.constant 0 : index
    %c0_6 = arith.constant 0 : index
    %12 = vector.load %arg3[%c0_5, %c0_6] : memref<4x128xf32, #tpu.memory_space<vmem>>, vector<1x128xf32>
    tpu.vector_store %arg3[%c0_5, %c0_6], %11 {strides = array<i32>} : memref<4x128xf32, #tpu.memory_space<vmem>>, vector<1x128xf32>,
    %c1_7 = arith.constant 1 : index
    %c2_8 = arith.constant 2 : index
    %13 = memref.load %arg2[%c1_7, %c2_8] : memref<4x3xf32, #tpu.memory_space<smem>>
    %14 = vector.broadcast %13 : f32 to vector<1x128xf32>
    %15 = arith.mulf %14, %0 : vector<1x128xf32>
    %c1_9 = arith.constant 1 : index
    %c1_10 = arith.constant 1 : index
    %16 = memref.load %arg2[%c1_9, %c1_10] : memref<4x3xf32, #tpu.memory_space<smem>>
    %17 = vector.broadcast %16 : f32 to vector<1x128xf32>
    %18 = arith.addf %15, %17 : vector<1x128xf32>
    %19 = arith.mulf %18, %0 : vector<1x128xf32>
    %c1_11 = arith.constant 1 : index
    %c0_12 = arith.constant 0 : index
    %20 = memref.load %arg2[%c1_11, %c0_12] : memref<4x3xf32, #tpu.memory_space<smem>>
    %21 = vector.broadcast %20 : f32 to vector<1x128xf32>
    %22 = arith.addf %19, %21 : vector<1x128xf32>
    %23 = arith.mulf %22, %0 : vector<1x128xf32>
    %c1_13 = arith.constant 1 : index
    %c0_14 = arith.constant 0 : index
    %24 = vector.load %arg3[%c1_13, %c0_14] : memref<4x128xf32, #tpu.memory_space<vmem>>, vector<1x128xf32>
    tpu.vector_store %arg3[%c1_13, %c0_14], %23 {strides = array<i32>} : memref<4x128xf32, #tpu.memory_space<vmem>>, vector<1x128xf32>,
    %c2_15 = arith.constant 2 : index
    %c2_16 = arith.constant 2 : index
    %25 = memref.load %arg2[%c2_15, %c2_16] : memref<4x3xf32, #tpu.memory_space<smem>>
    %26 = vector.broadcast %25 : f32 to vector<1x128xf32>
    %27 = arith.mulf %26, %0 : vector<1x128xf32>
    %c2_17 = arith.constant 2 : index
    %c1_18 = arith.constant 1 : index
    %28 = memref.load %arg2[%c2_17, %c1_18] : memref<4x3xf32, #tpu.memory_space<smem>>
    %29 = vector.broadcast %28 : f32 to vector<1x128xf32>
    %30 = arith.addf %27, %29 : vector<1x128xf32>
    %31 = arith.mulf %30, %0 : vector<1x128xf32>
    %c2_19 = arith.constant 2 : index
    %c0_20 = arith.constant 0 : index
    %32 = memref.load %arg2[%c2_19, %c0_20] : memref<4x3xf32, #tpu.memory_space<smem>>
    %33 = vector.broadcast %32 : f32 to vector<1x128xf32>
    %34 = arith.addf %31, %33 : vector<1x128xf32>
    %35 = arith.mulf %34, %0 : vector<1x128xf32>
    %c2_21 = arith.constant 2 : index
    %c0_22 = arith.constant 0 : index
    %36 = vector.load %arg3[%c2_21, %c0_22] : memref<4x128xf32, #tpu.memory_space<vmem>>, vector<1x128xf32>
    tpu.vector_store %arg3[%c2_21, %c0_22], %35 {strides = array<i32>} : memref<4x128xf32, #tpu.memory_space<vmem>>, vector<1x128xf32>,
    %c3 = arith.constant 3 : index
    %c2_23 = arith.constant 2 : index
    %37 = memref.load %arg2[%c3, %c2_23] : memref<4x3xf32, #tpu.memory_space<smem>>
    %38 = vector.broadcast %37 : f32 to vector<1x128xf32>
    %39 = arith.mulf %38, %0 : vector<1x128xf32>
    %c3_24 = arith.constant 3 : index
    %c1_25 = arith.constant 1 : index
    %40 = memref.load %arg2[%c3_24, %c1_25] : memref<4x3xf32, #tpu.memory_space<smem>>
    %41 = vector.broadcast %40 : f32 to vector<1x128xf32>
    %42 = arith.addf %39, %41 : vector<1x128xf32>
    %43 = arith.mulf %42, %0 : vector<1x128xf32>
    %c3_26 = arith.constant 3 : index
    %c0_27 = arith.constant 0 : index
    %44 = memref.load %arg2[%c3_26, %c0_27] : memref<4x3xf32, #tpu.memory_space<smem>>
    %45 = vector.broadcast %44 : f32 to vector<1x128xf32>
    %46 = arith.addf %43, %45 : vector<1x128xf32>
    %47 = arith.mulf %46, %0 : vector<1x128xf32>
    %c3_28 = arith.constant 3 : index
    %c0_29 = arith.constant 0 : index
    %48 = vector.load %arg3[%c3_28, %c0_29] : memref<4x128xf32, #tpu.memory_space<vmem>>, vector<1x128xf32>
    tpu.vector_store %arg3[%c3_28, %c0_29], %47 {strides = array<i32>} : memref<4x128xf32, #tpu.memory_space<vmem>>, vector<1x128xf32>,
    return
  }
  func.func @transform_0(%arg0: i32) -> (i32, i32) {
    %c0_i32 = arith.constant 0 : i32
    %c0_i32_0 = arith.constant 0 : i32
    return %c0_i32, %arg0 : i32, i32
  }
  func.func @transform_1(%arg0: i32) -> (i32, i32) {
    %c0_i32 = arith.constant 0 : i32
    %c0_i32_0 = arith.constant 0 : i32
    %c0_i32_1 = arith.constant 0 : i32
    return %c0_i32, %c0_i32_0 : i32, i32
  }
  func.func @transform_2(%arg0: i32) -> (i32, i32) {
    %c0_i32 = arith.constant 0 : i32
    %c0_i32_0 = arith.constant 0 : i32
    return %c0_i32, %arg0 : i32, i32
  }
}

</mosaic_0001>

<bundles_post_ra>
// kernel: tpu_custom_call.1
= control target key start
LH: loop header
LB: loop body
LE: loop exit
PB: predicated region body
PF: predicated region fallthrough
CT: control target
= control target key end

     0   :  { %7 = vsyncpa [#allocation3], 0  ;;  %s234_s0 = inlined_call_operand.hbm [shape: f32[1,128], index: 0, kind: input, shape index: {}]   ;;  %s235_s1 = inlined_call_operand.hbm [shape: f32[4,3], index: 1, kind: input, shape index: {}]   ;;  %s236_s2 = inlined_call_operand.hbm [shape: f32[4,128], index: 2, kind: output, shape index: {}]  }
   0x1   :  { %8 = vsyncpa [#allocation5], 0 }
   0x2   :  { %9 = vsyncpa [#allocation4], 0  ;;  %s174_s9 = smov [#allocation2]   ;;  %s114_s13 = scalar_lea.hbm %s234_s0, 16 }
   0x3   :  { %s16_s10 = sshll.u32 %s174_s9, 4  ;;  %p115_p0 = scmp.ne.s32.totalorder %s234_s0, %s114_s13  ;;  %s17_s10 = int_to_ptr.vmem [resolvable:$true] %s16_s10 }
   0x4   :  { %p118_p1 = scmp.lt.u32.totalorder %s114_s13, %s234_s0 }
   0x6   :  { %p120_p2 = pnand %p118_p1, %p115_p0 }
   0x8   :  { %123 = shalt.err (!%p120_p2)
}
   0x9   :  { %s124_s18 = scalar_lea.vmem %s17_s10, 16  ;;  %s128_s19 = scalar_lea.vmem %s17_s10, 32 }
   0xa   :  { %p125_p3 = scmp.ne.s32.totalorder %s17_s10, %s124_s18  ;;  %p129_p4 = scmp.lt.s32.totalorder %s17_s10, %s17_s10 }
   0xb   :  { %p130_p5 = scmp.lt.s32.totalorder %s128_s19, %s124_s18 }
   0xd   :  { %p131_p6 = por %p130_p5, %p129_p4 }
   0xf   :  { %p132_p7 = pnand %p131_p6, %p125_p3 }
  0x11   :  { %135 = shalt.err (!%p132_p7)
}
  0x12   :  { %19 = dma.hbm_to_vmem [thread:$0]  %s234_s0, 16, %s17_s10, [#allocation3]  }
  0x13   :  { %s136_s24 = scalar_lea.hbm %s235_s1, 64 }
  0x14   :  { %p137_p8 = scmp.ne.s32.totalorder %s235_s1, %s136_s24  ;;  %p140_p9 = scmp.lt.u32.totalorder %s136_s24, %s235_s1 }
  0x16   :  { %p142_p10 = pnand %p140_p9, %p137_p8 }
  0x18   :  { %145 = shalt.err (!%p142_p10)
}
  0x19   :  { %s175_s29 = smov [#allocation6]  }
  0x1a   :  { %27 = dma.hbm_to_smem %s235_s1, 64, %s175_s29, [#allocation5]  }
  0x1b   :  { %168 = dma.done.wait [#allocation3], 16  }
  0x1c   :  { %169 = vsyncadd [#allocation3], 4294967280 }
  0x1d   :  { %170 = dma.done.wait [#allocation5], 64  }
  0x1e   :  { %171 = vsyncadd [#allocation5], 4294967232 }
  0x1f   :  { %34 = sfence }
  0x20   :  { %s100_s0 = sld [smem:[#allocation6 + $0x2]]  ;;  %s101_s4 = sld [smem:[#allocation6 + $0x1]]  ;;  %v35_v0 = vld [vmem:[#allocation2] sm:$0x1] }
  0x21   :  { %s43_s5 = sld [smem:[#allocation6]]  ;;  %s102_s6 = sld [smem:[#allocation6 + $0x82]] }
  0x22   :  { %s103_s7 = sld [smem:[#allocation6 + $0x81]]  ;;  %s104_s8 = sld [smem:[#allocation6 + $0x80]] }
  0x23   :  { %s105_s9 = sld [smem:[#allocation6 + $0x102]]  ;;  %s106_s10 = sld [smem:[#allocation6 + $0x101]] }
  0x24   :  { %s108_s11 = sld [smem:[#allocation6 + $0x182]]  ;;  %s216_s12 = sld [smem:[#allocation6 + $0x100]] }
  0x25   :  { %s109_s13 = sld [smem:[#allocation6 + $0x181]]  ;;  %s218_s1 = sld [smem:[#allocation6 + $0x180]] }
  0x26   :  { %v37_v1 = vstv %s100_s0  ;;  %v40_v2 = vstv %s101_s4  ;;  %s176_s14 = smov [#allocation7]  }
  0x27   :  { %v38_v3 = vmul.f32 %v37_v1, %v35_v0  ;;  %v49_v4 = vstv %s102_s6  ;;  %v44_v10 = vstv %s43_s5  ;;  %s90_s15 = sshll.u32 %s176_s14, 4  ;;  %s91_s15 = int_to_ptr.vmem [resolvable:$true] %s90_s15 }
  0x28   :  { %v50_v5 = vmul.f32 %v49_v4, %v35_v0  ;;  %v52_v6 = vstv %s103_s7  ;;  %v56_v15 = vstv %s104_s8  ;;  %s146_s16 = scalar_lea.vmem %s91_s15, 64  ;;  %p151_p12 = scmp.lt.s32.totalorder %s91_s15, %s91_s15 }
  0x29   :  { %v41_v7 = vadd.f32 %v40_v2, %v38_v3  ;;  %v61_v8 = vstv %s105_s9  ;;  %v64_v9 = vstv %s106_s10  ;;  %p147_p11 = scmp.ne.s32.totalorder %s91_s15, %s146_s16  ;;  %p152_p13 = scmp.lt.s32.totalorder %s146_s16, %s146_s16 }
  0x2a   :  { %v53_v11 = vadd.f32 %v52_v6, %v50_v5  ;;  %v62_v12 = vmul.f32 %v61_v8, %v35_v0  ;;  %v73_v13 = vstv %s108_s11  ;;  %v68_v21 = vstv %s216_s12 }
  0x2b   :  { %v42_v14 = vmul.f32 %v41_v7, %v35_v0  ;;  %v74_v16 = vmul.f32 %v73_v13, %v35_v0  ;;  %v76_v17 = vstv %s109_s13  ;;  %v80_v25 = vstv %s218_s1  ;;  %p153_p0 = por %p152_p13, %p151_p12 }
  0x2c   :  { %v54_v18 = vmul.f32 %v53_v11, %v35_v0  ;;  %v65_v19 = vadd.f32 %v64_v9, %v62_v12 }
  0x2d   :  { %v45_v20 = vadd.f32 %v44_v10, %v42_v14  ;;  %v77_v22 = vadd.f32 %v76_v17, %v74_v16  ;;  %p154_p1 = pnand %p153_p0, %p147_p11 }
  0x2e   :  { %v57_v23 = vadd.f32 %v56_v15, %v54_v18  ;;  %v66_v24 = vmul.f32 %v65_v19, %v35_v0 }
  0x2f   :  { %v46_v26 = vmul.f32 %v45_v20, %v35_v0  ;;  %v78_v27 = vmul.f32 %v77_v22, %v35_v0 }
  0x30   :  { %v58_v28 = vmul.f32 %v57_v23, %v35_v0  ;;  %v69_v29 = vadd.f32 %v68_v21, %v66_v24 }
  0x31   :  { %47 = vst [vmem:[#allocation7] sm:$0x1] %v46_v26  ;;  %v81_v30 = vadd.f32 %v80_v25, %v78_v27 }
  0x32   :  { %59 = vst [vmem:[#allocation7 + $0x1] sm:$0x1] %v58_v28  ;;  %v70_v31 = vmul.f32 %v69_v29, %v35_v0 }
  0x33   :  { %v82_v32 = vmul.f32 %v81_v30, %v35_v0 }
  0x34   :  { %71 = vst [vmem:[#allocation7 + $0x2] sm:$0x1] %v70_v31 }
  0x35   :  { %83 = vst [vmem:[#allocation7 + $0x3] sm:$0x1] %v82_v32 }
  0x36   :  { %157 = shalt.err (!%p154_p1)
}
  0x37   :  { %s158_s19 = scalar_lea.hbm %s236_s2, 64 }
  0x38   :  { %p159_p2 = scmp.ne.s32.totalorder %s236_s2, %s158_s19  ;;  %p162_p3 = scmp.lt.u32.totalorder %s158_s19, %s236_s2 }
  0x3a   :  { %p164_p4 = pnand %p162_p3, %p159_p2 }
  0x3c   :  { %167 = shalt.err (!%p164_p4)
}
  0x3d   :  { %93 = dma.vmem_to_hbm [thread:$0]  %s91_s15, 64, %s236_s2, [#allocation4]  }
  0x3e   :  { %172 = dma.done.wait [#allocation4], 64  }
  0x3f   :  { %173 = vsyncadd [#allocation4], 4294967232 }
  0x40   :  { %97 = vsyncpa [#allocation3], 1 }
  0x41   :  { %98 = vsyncpa [#allocation4], 1 }
  0x42   :  { %99 = vsyncpa [#allocation5], 1 }

</bundles_post_ra>
